<compile_context>
chip_gen: v6e
topology: v6e:2x2x1
jax: 0.10.0
libtpu: 0.0.40
codegen_flags: <defaults>
</compile_context>

<pallas_src>
import math

import jax
import jax.numpy as jnp
from jax.experimental import pallas as pl
from jax.experimental.pallas import tpu as pltpu


def _erf(x):
    # Abramowitz & Stegun 7.1.26 rational approximation (|err| < 1.5e-7).
    # The single exp() runs on the EUP slot; the rest is a handful of VALU
    # ops that hide under the MXU.
    a1, a2, a3, a4, a5 = (0.254829592, -0.284496736, 1.421413741,
                          -1.453152027, 1.061405429)
    p = 0.3275911
    s = jnp.where(x >= 0.0, 1.0, -1.0)
    ax = jnp.abs(x)
    t = 1.0 / (1.0 + p * ax)
    poly = ((((a5 * t + a4) * t + a3) * t + a2) * t + a1) * t
    return s * (1.0 - poly * jnp.exp(-ax * ax))


def _gelu(x):
    # exact BERT gelu: x * 0.5 * (1 + erf(x / sqrt(2)))
    return x * 0.5 * (1.0 + _erf(x * (1.0 / math.sqrt(2.0))))


def bert_intermediate_kernel(x_ref, w_ref, b_ref, o_ref):
    # x_ref: (TM, H)   w_ref: (H, I) bf16   b_ref: (1, I) f32   o_ref: (TM, I)
    x = x_ref[...]
    if x.dtype != w_ref.dtype:
        # Cast to the MXU-native dtype in-kernel: cheap VPU cast, avoids a
        # separate wrapper-side XLA pass over the (M, H) activations.
        x = x.astype(w_ref.dtype)
    y = jnp.dot(x, w_ref[...], preferred_element_type=jnp.float32)
    y = y + b_ref[...]                       # f32 bias broadcasts over rows
    o_ref[...] = _gelu(y).astype(o_ref.dtype)


def bert_intermediate(hidden_states, w, b, *, block_rows=512,
                      compute_dtype=jnp.bfloat16, out_dtype=None):
    """gelu(hidden_states @ w + b), row-tiled over the flattened (B*S) axis."""
    *lead, H = hidden_states.shape
    I = w.shape[1]
    out_dtype = hidden_states.dtype if out_dtype is None else out_dtype

    # The MXU is bf16-native on v5e/v6e/v7x: convert the reused weight once
    # here (halves its resident VMEM / HBM read); bias stays f32 (added after
    # the f32 accumulation).
    w_mm = w if w.dtype == compute_dtype else w.astype(compute_dtype)
    b_f32 = b.astype(jnp.float32).reshape(1, I)

    # Collapse batch/seq into one row axis -> one tall LHS for the MXU.
    x2d = hidden_states.reshape(-1, H)
    M = x2d.shape[0]

    # Row tile: big enough to amortize ~0.35us/grid-step, small enough to fit
    # v7x's 64 MiB VMEM alongside the resident weight.
    tm = M if M <= block_rows else block_rows
    # v7x megacore: ensure >= 2 row tiles so both TensorCores get work when M
    # allows it (one extra ~0.35us step on single-core v5e/v6e -> negligible).
    if M >= 16 and pl.cdiv(M, tm) < 2:
        tm = ((M // 2) + 7) // 8 * 8
    grid = (pl.cdiv(M, tm),)   # no host-side pad: Pallas masks the edge block

    # Explicit scoped-VMEM budget: single-buffered weight/bias + double-
    # buffered activation/output tiles, plus headroom for compiler scratch.
    def _isz(dt):
        return jnp.dtype(dt).itemsize
    vmem_bytes = (H * I * _isz(compute_dtype)              # weight (1 buffer)
                  + I * 4                                  # bias   (1 buffer)
                  + 2 * tm * H * _isz(hidden_states.dtype)
                  + 2 * tm * I * _isz(out_dtype))
    vmem_limit = min(128 * 1024 * 1024,
                     max(32 * 1024 * 1024, int(vmem_bytes * 1.5)))

    # TODO(synk): for very large intermediate sizes (I >= 8192) or f32-resident
    # weights on v5e/v7x, add a second grid axis over I streaming (H, tn)
    # weight slabs instead of keeping the whole weight VMEM-resident.
    out2d = pl.pallas_call(
        bert_intermediate_kernel,
        grid=grid,
        in_specs=[
            pl.BlockSpec((tm, H), lambda i: (i, 0)),        # activation rows
            pl.BlockSpec((H, I), lambda i: (0, 0),          # weight: constant
                         pipeline_mode=pl.Buffered(1)),     #   -> 1 buffer
            pl.BlockSpec((1, I), lambda i: (0, 0),          # bias: constant
                         pipeline_mode=pl.Buffered(1)),
        ],
        out_specs=pl.BlockSpec((tm, I), lambda i: (i, 0)),  # lane-dense store
        out_shape=jax.ShapeDtypeStruct((M, I), out_dtype),
        compiler_params=pltpu.CompilerParams(
            dimension_semantics=("parallel",),
            vmem_limit_bytes=vmem_limit),
    )(x2d, w_mm, b_f32)

    return out2d.reshape(*lead, I)


if __name__ == "__main__":
    B, S, HIDDEN, INTER = 2, 8, 32, 64   # config.hidden_size / intermediate_size
    key = jax.random.PRNGKey(0)
    kx, kw, kb = jax.random.split(key, 3)

    hidden_states = jax.random.normal(kx, (B, S, HIDDEN), jnp.float32)
    # nn.Linear(HIDDEN, INTER), stored as (in, out):  y = x @ W + b
    w = 0.02 * jax.random.normal(kw, (HIDDEN, INTER), jnp.float32)
    b = 0.01 * jax.random.normal(kb, (1, INTER), jnp.float32)

    out = bert_intermediate(hidden_states, w, b)
    jax.block_until_ready(out)
    assert out.shape == (B, S, INTER)

    # Reference with the same bf16-operand / f32-accumulate matmul, exact erf.
    x2d = hidden_states.reshape(-1, HIDDEN)
    y_ref = jnp.dot(x2d.astype(jnp.bfloat16), w.astype(jnp.bfloat16),
                    preferred_element_type=jnp.float32) + b
    ref = y_ref * 0.5 * (1.0 + jax.scipy.special.erf(y_ref / math.sqrt(2.0)))
    ref = ref.reshape(B, S, INTER)
    assert jnp.max(jnp.abs(out - ref)) < 1e-5, float(jnp.max(jnp.abs(out - ref)))

    # Loose sanity check vs. the full-f32 PyTorch-semantics reference
    # (difference is bf16 operand rounding only).
    y32 = x2d @ w + b
    ref32 = (y32 * 0.5 * (1.0 + jax.scipy.special.erf(y32 / math.sqrt(2.0)))
             ).reshape(B, S, INTER)
    assert jnp.max(jnp.abs(out - ref32)) < 2e-2, float(jnp.max(jnp.abs(out - ref32)))

    print("KERNEL_OK")
</pallas_src>

<mosaic_0001>
module attributes {stable_mosaic.version = 11 : i64} {
  func.func @bert_intermediate_kernel(%arg0: i32, %arg1: memref<8x32xf32, #tpu.memory_space<vmem>>, %arg2: memref<32x64xbf16, #tpu.memory_space<vmem>>, %arg3: memref<1x64xf32, #tpu.memory_space<vmem>>, %arg4: memref<8x64xf32, #tpu.memory_space<vmem>>) attributes {dimension_semantics = [#tpu.dimension_semantics<parallel>], iteration_bounds = array<i64: 2>, scalar_prefetch = 0 : i64, scratch_operands = 0 : i64, tpu.core_type = #tpu.core_type<tc>, window_params = [{transform_indices = @transform_0, window_bounds = array<i64: 8, 32>}, {pipeline_mode = #tpu.pipeline_mode<synchronous>, transform_indices = @transform_1, window_bounds = array<i64: 32, 64>}, {pipeline_mode = #tpu.pipeline_mode<synchronous>, transform_indices = @transform_2, window_bounds = array<i64: 1, 64>}, {transform_indices = @transform_3, window_bounds = array<i64: 8, 64>}]} {
    %c0 = arith.constant 0 : index
    %c0_0 = arith.constant 0 : index
    %0 = vector.load %arg1[%c0, %c0_0] : memref<8x32xf32, #tpu.memory_space<vmem>>, vector<8x32xf32>
    %1 = arith.truncf %0 : vector<8x32xf32> to vector<8x32xbf16>
    %c0_1 = arith.constant 0 : index
    %c0_2 = arith.constant 0 : index
    %2 = vector.load %arg2[%c0_1, %c0_2] : memref<32x64xbf16, #tpu.memory_space<vmem>>, vector<32x64xbf16>
    %cst = arith.constant dense<0.000000e+00> : vector<8x64xf32>
    %3 = tpu.matmul %1, %2, %cst {dimension_numbers = #tpu.dot_dimension_numbers<[1], [0], [0], [1], [0, 0, 1, 1], [], []>} : vector<8x32xbf16>, vector<32x64xbf16>, vector<8x64xf32> -> vector<8x64xf32>
    %c0_3 = arith.constant 0 : index
    %c0_4 = arith.constant 0 : index
    %4 = vector.load %arg3[%c0_3, %c0_4] : memref<1x64xf32, #tpu.memory_space<vmem>>, vector<1x64xf32>
    %5 = vector.broadcast %4 : vector<1x64xf32> to vector<8x64xf32>
    %6 = arith.addf %3, %5 : vector<8x64xf32>
    %cst_5 = arith.constant 5.000000e-01 : f32
    %7 = vector.broadcast %cst_5 : f32 to vector<8x64xf32>
    %8 = arith.mulf %6, %7 : vector<8x64xf32>
    %cst_6 = arith.constant 0.707106769 : f32
    %9 = vector.broadcast %cst_6 : f32 to vector<8x64xf32>
    %10 = arith.mulf %6, %9 : vector<8x64xf32>
    %cst_7 = arith.constant 0.000000e+00 : f32
    %11 = vector.broadcast %cst_7 : f32 to vector<8x64xf32>
    %12 = arith.cmpf oge, %10, %11 : vector<8x64xf32>
    %cst_8 = arith.constant 1.000000e+00 : f32
    %cst_9 = arith.constant -1.000000e+00 : f32
    %13 = vector.broadcast %cst_8 : f32 to vector<8x64xf32>
    %14 = vector.broadcast %cst_9 : f32 to vector<8x64xf32>
    %15 = arith.select %12, %13, %14 : vector<8x64xi1>, vector<8x64xf32>
    %16 = math.absf %10 : vector<8x64xf32>
    %cst_10 = arith.constant 0.327591091 : f32
    %17 = vector.broadcast %cst_10 : f32 to vector<8x64xf32>
    %18 = arith.mulf %17, %16 : vector<8x64xf32>
    %cst_11 = arith.constant 1.000000e+00 : f32
    %19 = vector.broadcast %cst_11 : f32 to vector<8x64xf32>
    %20 = arith.addf %19, %18 : vector<8x64xf32>
    %cst_12 = arith.constant 1.000000e+00 : f32
    %21 = vector.broadcast %cst_12 : f32 to vector<8x64xf32>
    %22 = arith.divf %21, %20 : vector<8x64xf32>
    %cst_13 = arith.constant 1.06140542 : f32
    %23 = vector.broadcast %cst_13 : f32 to vector<8x64xf32>
    %24 = arith.mulf %23, %22 : vector<8x64xf32>
    %cst_14 = arith.constant -1.45315206 : f32
    %25 = vector.broadcast %cst_14 : f32 to vector<8x64xf32>
    %26 = arith.addf %24, %25 : vector<8x64xf32>
    %27 = arith.mulf %26, %22 : vector<8x64xf32>
    %cst_15 = arith.constant 1.42141378 : f32
    %28 = vector.broadcast %cst_15 : f32 to vector<8x64xf32>
    %29 = arith.addf %27, %28 : vector<8x64xf32>
    %30 = arith.mulf %29, %22 : vector<8x64xf32>
    %cst_16 = arith.constant -0.284496725 : f32
    %31 = vector.broadcast %cst_16 : f32 to vector<8x64xf32>
    %32 = arith.addf %30, %31 : vector<8x64xf32>
    %33 = arith.mulf %32, %22 : vector<8x64xf32>
    %cst_17 = arith.constant 0.254829586 : f32
    %34 = vector.broadcast %cst_17 : f32 to vector<8x64xf32>
    %35 = arith.addf %33, %34 : vector<8x64xf32>
    %36 = arith.mulf %35, %22 : vector<8x64xf32>
    %cst_18 = arith.constant 0.000000e+00 : f32
    %37 = vector.broadcast %cst_18 : f32 to vector<8x64xf32>
    %38 = arith.subf %37, %16 : vector<8x64xf32>
    %39 = arith.mulf %38, %16 : vector<8x64xf32>
    %40 = math.exp %39 : vector<8x64xf32>
    %41 = arith.mulf %36, %40 : vector<8x64xf32>
    %cst_19 = arith.constant 1.000000e+00 : f32
    %42 = vector.broadcast %cst_19 : f32 to vector<8x64xf32>
    %43 = arith.subf %42, %41 : vector<8x64xf32>
    %44 = arith.mulf %15, %43 : vector<8x64xf32>
    %cst_20 = arith.constant 1.000000e+00 : f32
    %45 = vector.broadcast %cst_20 : f32 to vector<8x64xf32>
    %46 = arith.addf %45, %44 : vector<8x64xf32>
    %47 = arith.mulf %8, %46 : vector<8x64xf32>
    %c0_21 = arith.constant 0 : index
    %c0_22 = arith.constant 0 : index
    %48 = vector.load %arg4[%c0_21, %c0_22] : memref<8x64xf32, #tpu.memory_space<vmem>>, vector<8x64xf32>
    tpu.vector_store %arg4[%c0_21, %c0_22], %47 {strides = array<i32>} : memref<8x64xf32, #tpu.memory_space<vmem>>, vector<8x64xf32>,
    return
  }
  func.func @transform_0(%arg0: i32) -> (i32, i32) {
    %c0_i32 = arith.constant 0 : i32
    %c0_i32_0 = arith.constant 0 : i32
    return %arg0, %c0_i32 : i32, i32
  }
  func.func @transform_1(%arg0: i32) -> (i32, i32) {
    %c0_i32 = arith.constant 0 : i32
    %c0_i32_0 = arith.constant 0 : i32
    %c0_i32_1 = arith.constant 0 : i32
    return %c0_i32, %c0_i32_0 : i32, i32
  }
  func.func @transform_2(%arg0: i32) -> (i32, i32) {
    %c0_i32 = arith.constant 0 : i32
    %c0_i32_0 = arith.constant 0 : i32
    %c0_i32_1 = arith.constant 0 : i32
    return %c0_i32, %c0_i32_0 : i32, i32
  }
  func.func @transform_3(%arg0: i32) -> (i32, i32) {
    %c0_i32 = arith.constant 0 : i32
    %c0_i32_0 = arith.constant 0 : i32
    return %arg0, %c0_i32 : i32, i32
  }
}

</mosaic_0001>

<bundles_post_ra>
// kernel: tpu_custom_call.1
= control target key start
LH: loop header
LB: loop body
LE: loop exit
PB: predicated region body
PF: predicated region fallthrough
CT: control target
= control target key end

     0   :  { %8 = vsyncpa [#allocation3], 0  ;;  %s804_s0 = inlined_call_operand.hbm [shape: f32[16,32], index: 0, kind: input, shape index: {}]   ;;  %s805_s1 = inlined_call_operand.hbm [shape: bf16[32,64], index: 1, kind: input, shape index: {}]   ;;  %s806_s2 = inlined_call_operand.vmem [shape: f32[1,64], index: 2, kind: input, shape index: {}]   ;;  %s807_s3 = inlined_call_operand.hbm [shape: f32[16,64], index: 3, kind: output, shape index: {}]  }
   0x1   :  { %10 = vsyncpa [#allocation3 + $0x1], 0 }
   0x2   :  { %11 = vsyncpa [#allocation6], 0 }
   0x3   :  { %12 = vsyncpa [#allocation4], 0 }
   0x4   :  { %14 = vsyncpa [#allocation4 + $0x1], 0  ;;  %s643_s12 = smov 0   ;;  %s645_s13 = smov 0  }
   0x5   :  { %s647_s14 = smov 0   ;;  %s649_s15 = smov 0  }
   0x6 LB: > { %s664_s16 = sadd.s32 4294967295, %s613_s15   ;;  %s394_s17 = sadd.s32 4294967294, %s613_s15   ;;  %s613_s15 = sphi %s649_s15, %s829_s15   ;;  %s609_s14 = sphi %s647_s14, %s828_s14   ;;  %s605_s13 = sphi %s645_s13, %s827_s13   ;;  %s601_s12 = sphi %s643_s12, %s826_s12  }
   0x7   : > { %p40_p0 = scmp.ne.s32.totalorder %s605_s13, %s601_s12  ;;  %p808_p1 = scmp.eq.s32.totalorder %s664_s16, 0 }
   0x8   : > { %p112_p3 = scmp.eq.s32.totalorder %s394_s17, 1  ;;  %p395_p5 = scmp.ge.s32.totalorder %s613_s15, 1 }
   0x9   : > { %p673_p4 = por %p808_p1, %p40_p0  ;;  %p119_p7 = scmp.lt.s32.totalorder %s613_s15, 3 }
   0xa   : > { %p678_p6 = por %p112_p3, %p40_p0  ;;  %s615_s21 = smov [#allocation5]  }
   0xb   : > { %s812_s18 = scalar_select %p673_p4, 1, 0 }
   0xc   : > { %s813_s19 = scalar_select %p678_p6, 1, 0 }
   0xd   : > { %p683_p8 = pnand %p395_p5, %p119_p7  ;;  %s131_s22 = sshll.u32 %s615_s21, 4  ;;  %s132_s22 = int_to_ptr.vmem [resolvable:$true] %s131_s22 }
   0xe   : > { %s697_s24 = sadd.s32 1, %s613_s15   ;;  %s27_s25 = sadd.s32 1, %s609_s14 }
   0xf   : > { %s814_s20 = scalar_select %p683_p8, 1, 0 }
  0x10   : > { %p431_p9 = pneg %p683_p8  ;;  %s24_s26 = ssub.s32 %s613_s15, %s697_s24 }
  0x11   : > { %s502_s27 = scalar_lea.vmem %s132_s22, 256  ;;  %p510_p5 = scmp.lt.s32.totalorder %s132_s22, %s132_s22 }
  0x12   : > { %p692_p11 = pnand %p431_p9, %p808_p1  ;;  %p503_p13 = scmp.ne.s32.totalorder %s132_s22, %s502_s27 }
  0x13   : > { %p511_p7 = scmp.lt.s32.totalorder %s502_s27, %s502_s27 }
  0x14   : > { %p493_p12 = pneg %p692_p11 }
  0x15   : > { %p512_p10 = por %p511_p7, %p510_p5 }
  0x16   : > { %p505_p0 = pnand %p503_p13, %p493_p12 }
  0x18   : > { %p506_p3 = pneg %p505_p0 }
  0x1a   : > { %p513_p2 = pnand %p512_p10, %p506_p3 }
  0x1c   : > { %516 = shalt.err (!%p513_p2)
}
  0x1d   : > { %s616_s28 = smov 64   ;;  %s617_s29 = smov 4  }
  0x1e   : > { %434 = dma.hbm_to_vmem [thread:$0]  (!%p692_p11), %s805_s1, 256, %s132_s22, [#allocation6], %s616_s28, %s616_s28, %s617_s29  }
  0x1f   : > { %p25_p9 = scmp.eq.s32.totalorder %s24_s26, 0  ;;  %p34_p12 = scmp.ne.s32.totalorder %s609_s14, %s605_s13 }
  0x20   : > { %p35_p10 = scmp.eq.s32.totalorder %s613_s15, 0  ;;  %p444_p2 = scmp.lt.s32.totalorder %s613_s15, 2 }
  0x21   : > { %s714_s5 = scalar_select %p25_p9, %s609_s14, %s27_s25  }
  0x22   : > { %p36_p13 = por %p35_p10, %p34_p12  ;;  %p816_p0 = scmp.eq.s32.totalorder %s664_s16, 1 }
  0x23   : > { %s148_s7 = sand.u32 1, %s609_s14   ;;  %s399_s8 = sshll.u32 %s613_s15, 7 }
  0x24   : > { %p718_p3 = por %p816_p0, %p34_p12  ;;  %s398_s9 = sshll.u32 %s148_s7, 3 }
  0x25   : > { %s727_s17 = scalar_lea.hbm %s804_s0, %s399_s8  ;;  %s152_s21 = scalar_lea.vmem [#allocation2], %s398_s9 }
  0x26   : > { %s817_s6 = scalar_select %p718_p3, 1, 0 }
  0x27   : > { %s159_s22 = sshll.u32 %s152_s21, 4  ;;  %p729_p11 = pnand %p444_p2, %p36_p13  ;;  %s160_s22 = int_to_ptr.vmem [resolvable:$true] %s159_s22 }
  0x28   : > { %s149_s25 = scalar_lea.sflag [#allocation3], %s148_s7  ;;  %s517_s26 = scalar_lea.hbm %s727_s17, 128 }
  0x29   : > { %p518_p5 = scmp.ne.s32.totalorder %s727_s17, %s517_s26  ;;  %p519_p7 = pneg %p729_p11 }
  0x2a   : > { %s522_s29 = scalar_lea.hbm %s804_s0, 256  ;;  %p523_p10 = scmp.lt.s32.totalorder %s727_s17, %s804_s0 }
  0x2b   : > { %p520_p9 = pnand %p519_p7, %p518_p5  ;;  %p524_p2 = scmp.lt.s32.totalorder %s522_s29, %s517_s26 }
  0x2d   : > { %p521_p12 = pneg %p520_p9  ;;  %p525_p13 = por %p524_p2, %p523_p10 }
  0x2f   : > { %p526_p0 = pnand %p525_p13, %p521_p12 }
  0x31   : > { %529 = shalt.err (!%p526_p0)
}
  0x32   : > { %s530_s8 = scalar_lea.vmem %s160_s22, 128  ;;  %s618_s7 = smov [#allocation2]  }
  0x33   : > { %p531_p1 = scmp.ne.s32.totalorder %s160_s22, %s530_s8  ;;  %s535_s9 = sshll.u32 %s618_s7, 4  ;;  %s536_s9 = int_to_ptr.vmem [resolvable:$false] %s535_s9 }
  0x34   : > { %s537_s10 = scalar_lea.vmem %s536_s9, 256  ;;  %p538_p5 = scmp.lt.s32.totalorder %s160_s22, %s536_s9 }
  0x35   : > { %p533_p6 = pnand %p531_p1, %p519_p7  ;;  %p539_p9 = scmp.lt.s32.totalorder %s537_s10, %s530_s8 }
  0x37   : > { %p534_p3 = pneg %p533_p6  ;;  %p540_p4 = por %p539_p9, %p538_p5 }
  0x39   : > { %p541_p8 = pnand %p540_p4, %p534_p3 }
  0x3b   : > { %544 = shalt.err (!%p541_p8)
}
  0x3c   : > { %438 = dma.hbm_to_vmem [thread:$0]  (!%p729_p11), %s727_s17, 128, %s160_s22, %s149_s25  }
  0x3d   : > { %p819_p12 = scmp.ne.s32.totalorder %s814_s20, 0 }
  0x3e   : > { %s750_s11 = sand.u32 (!%p819_p12), 1, %s605_s13   ;;  %p820_p1 = scmp.ne.s32.totalorder (!%p819_p12), %s812_s18, 0 }
  0x3f   : > { %168 = sbr.rel (%p819_p12) target bundleno = 339 (0x153), region = 32  ;;  %s401_s21 = sshll.u32 (!%p819_p12), %s750_s11, 3 }
  0x40   : > { %s171_s26 = scalar_lea.sflag (!%p819_p12), [#allocation3], %s750_s11  ;;  %s174_s27 = scalar_lea.vmem (!%p819_p12), [#allocation2], %s401_s21 }
  0x44   : > { %588 = dma.done.wait (%p820_p1), %s171_s26, 128  }
  0x45   : > { %590 = vsyncadd (%p820_p1), %s171_s26, 4294967168  ;;  %p821_p4 = scmp.eq.s32.totalorder %s664_s16, 0 }
  0x47   : > { %592 = dma.done.wait (%p821_p4), [#allocation6], 256   ;;  %p822_p6 = pmov %p821_p4 }
  0x48   : > { %v619_v0 = vmov 0.0   ;;  %vm620_vm0 = vmmov 0   ;;  %v485_v1 = vld [vmem:[#allocation5 + $0x8] sm:$0xff]   ;;  %v486_v2 = vld [vmem:[#allocation5] sm:$0xff]   ;;  %v202_v3 = vld [vmem:[%s174_s27] sm:$0xff]  ;;  %vm227_vm1 = vcmask 261120  }
  0x49   : > { %594 = vsyncadd (%p822_p6), [#allocation6], 4294967040  ;;  %415 = vmatprep.subr.bf16.mxu0 %v619_v0  ;;  %419 = vmatprep.mubr.msk.bf16.mxu0 %vm620_vm0, %v619_v0  ;;  %v203_v4 = vpack.c.bf16 %v202_v3, %v202_v3  ;;  %v404_v5 = vld [vmem:[%s806_s2] ss:$0 sm:$0xff]  ;;  %v621_v31 = vmov -1.0   ;;  %s409_s17 = sshll.u32 %s664_s16, 7 }
  0x4a   : > { %416 = vmatpush3.bf16.msra.mxu0 %v485_v1  ;;  %s200_s22 = scalar_lea.vmem [#allocation7], %s401_s21  ;;  %vm298_vm3 = vcmask 523264   ;;  %s312_s29 = scalar_lea.hbm %s807_s3, %s409_s17 }
  0x4b   : > { %417 = vmatprep.subr.bf16.mxu0 %v619_v0  ;;  %s314_s23 = sshll.u32 %s200_s22, 4  ;;  %s301_s30 = scalar_lea.sflag [#allocation4], %s750_s11  ;;  %s315_s23 = int_to_ptr.vmem [resolvable:$true] %s314_s23 }
  0x4c   : > { %s545_s4 = scalar_lea.vmem %s315_s23, 128  ;;  %p823_p3 = scmp.ne.s32.totalorder %s817_s6, 0 }
  0x4d   : > { %p546_p8 = scmp.ne.s32.totalorder %s315_s23, %s545_s4  ;;  %s622_s16 = smov [#allocation7]  }
  0x4e   : > { %418 = vmatpush3.bf16.msra.mxu0 %v486_v2  ;;  %s549_s8 = sshll.u32 %s622_s16, 4  ;;  %s550_s8 = int_to_ptr.vmem [resolvable:$false] %s549_s8 }
  0x4f   : > { %p547_p11 = pnand %p546_p8, %p823_p3  ;;  %s551_s7 = scalar_lea.vmem %s550_s8, 256 }
  0x50   : > { %p552_p10 = scmp.lt.s32.totalorder %s315_s23, %s550_s8  ;;  %p553_p2 = scmp.lt.s32.totalorder %s551_s7, %s545_s4 }
  0x51   : > { %420 = vmatmul.mubr.msk.bf16.vlgmr.msra.gmra.mxu0 %vm227_vm1, %v203_v4  ;;  %p548_p7 = pneg %p547_p11 }
  0x52   : > { %p554_p13 = por %p553_p2, %p552_p10 }
  0x54   : > { %p555_p0 = pnand %p554_p13, %p548_p7 }
 0x111   : > { %v265_v6 = vpop.f32.mrf.mxu0 }
 0x112   : > { %v266_v7 = vadd.f32 %v404_v5, %v265_v6 }
 0x113   : > { %v421_v8 = vpop.f32.mrf.mxu0 }
 0x114   : > { %v272_v9 = vmul.f32 0.70710677, %v266_v7  ;;  %v271_v34 = vmul.f32 0.5, %v266_v7 }
 0x115   : > { %v268_v10 = vpop.f32.mrf.mxu0 }
 0x116   : > { %v275_v11 = vand.u32 2147483647, %v272_v9  ;;  %vm273_vm2 = vcmp.ge.f32.partialorder %v272_v9, 0.0 }
 0x117   : > { %v422_v12 = vpop.f32.mrf.mxu0  ;;  %v274_v32 = vsel %vm273_vm2, 1.0, %v621_v31 }
 0x118   : > { %v276_v13 = vmul.f32 0.3275911, %v275_v11  ;;  %v289_v15 = vsub.f32 0.0, %v275_v11 }
 0x11a   : > { %v277_v14 = vadd.f32 1.0, %v276_v13  ;;  %v290_v16 = vmul.f32 %v289_v15, %v275_v11 }
 0x11c   : > { %487 = vrcp.f32 %v277_v14  ;;  %v291_v19 = vmul.f32 1.442695, %v290_v16 }
 0x11e   : > { %489 = vpow2.f32 %v291_v19 }
 0x129   : > { %v488_v17 = vpop.eup %487 }
 0x12a   : > { %v280_v18 = vmul.f32 1.0614054, %v488_v17 }
 0x12b   : > { %v490_v28 = vpop.eup %489 }
 0x12c   : > { %v281_v20 = vadd.f32 -1.4531521, %v280_v18 }
 0x12e   : > { %v282_v21 = vmul.f32 %v488_v17, %v281_v20 }
 0x130   : > { %v283_v22 = vadd.f32 1.4214138, %v282_v21 }
 0x132   : > { %v284_v23 = vmul.f32 %v488_v17, %v283_v22 }
 0x134   : > { %v285_v24 = vadd.f32 -0.28449672, %v284_v23 }
 0x136   : > { %v286_v25 = vmul.f32 %v488_v17, %v285_v24 }
 0x138   : > { %v287_v26 = vadd.f32 0.2548296, %v286_v25 }
 0x13a   : > { %v288_v27 = vmul.f32 %v488_v17, %v287_v26 }
 0x13c   : > { %v293_v29 = vmul.f32 %v490_v28, %v288_v27 }
 0x13e   : > { %v294_v30 = vsub.f32 1.0, %v293_v29 }
 0x140   : > { %v295_v33 = vmul.f32 %v294_v30, %v274_v32 }
 0x142   : > { %v296_v35 = vadd.f32 1.0, %v295_v33 }
 0x144   : > { %v297_v36 = vmul.f32 %v296_v35, %v271_v34 }
 0x146   : > { %299 = vst.msk [vmem:[%s200_s22] sm:$0xff] %vm298_vm3, %v297_v36 }
 0x147   : > { %558 = shalt.err (!%p555_p0)
}
 0x148   : > { %s559_s9 = scalar_lea.hbm %s312_s29, 128  ;;  %s563_s21 = scalar_lea.hbm %s807_s3, 256 }
 0x149   : > { %p560_p5 = scmp.ne.s32.totalorder %s312_s29, %s559_s9  ;;  %p564_p1 = scmp.lt.s32.totalorder %s312_s29, %s807_s3 }
 0x14a   : > { %p565_p4 = scmp.lt.s32.totalorder %s563_s21, %s559_s9 }
 0x14b   : > { %p561_p9 = pnand %p560_p5, %p823_p3 }
 0x14c   : > { %p566_p6 = por %p565_p4, %p564_p1 }
 0x14d   : > { %p562_p12 = pneg %p561_p9 }
 0x14f   : > { %p567_p8 = pnand %p566_p6, %p562_p12 }
 0x151   : > { %570 = shalt.err (!%p567_p8)
}
 0x152   : > { %429 = dma.vmem_to_hbm [thread:$0]  (%p823_p3), %s315_s23, 128, %s312_s29, %s301_s30  }
 0x153 PF: > { %s326_s18 = sand.u32 1, %s601_s12   ;;  %p824_p11 = scmp.ne.s32.totalorder %s813_s19, 0 }
 0x154   : > { %p825_p7 = scmp.ge.s32.totalorder %s613_s15, 2  ;;  %s327_s20 = scalar_lea.sflag [#allocation4], %s326_s18 }
 0x156   : > { %p440_p10 = pnand %p825_p7, %p824_p11 }
 0x158   : > { %p441_p2 = pneg %p440_p10 }
 0x15a   : > { %596 = dma.done.wait (%p441_p2), %s327_s20, 128  }
 0x15b   : > { %598 = vsyncadd (%p441_p2), %s327_s20, 4294967168  ;;  %p17_p13 = scmp.ge.s32.totalorder %s697_s24, 4   ;;  %s826_s12 = smov %s605_s13 }
 0x15c   : > { %s827_s13 = smov %s609_s14  ;;  %s828_s14 = smov %s714_s5 }
 0x15d   : > { %s829_s15 = smov %s697_s24  ;;  %19 = sbr.rel (!%p17_p13) target bundleno = 6 (0x6), region = 81 }
 0x162   :  { %332 = vsyncpa [#allocation3], 1 }
 0x163   :  { %334 = vsyncpa [#allocation3 + $0x1], 1 }
 0x164   :  { %335 = vsyncpa [#allocation6], 1 }
 0x165   :  { %336 = vsyncpa [#allocation4], 1 }
 0x166   :  { %338 = vsyncpa [#allocation4 + $0x1], 1 }

</bundles_post_ra>
